<compile_context>
chip_gen: v7x
topology: tpu7x:2x2x1
jax: 0.10.0
libtpu: 0.0.40
codegen_flags: <defaults>
</compile_context>

<pallas_src>
import jax
import jax.numpy as jnp
from jax.experimental import pallas as pl
from jax.experimental.pallas import tpu as pltpu

LANE = 128  # lane-padded feature width used for every layer


# --------------------------------------------------------------------------
# One-time parameter packing (call when params are created / updated,
# NOT per forward call).
# --------------------------------------------------------------------------
def _pad_to(arr, shape):
    out = jnp.zeros(shape, jnp.float32)
    return out.at[tuple(slice(0, s) for s in arr.shape)].set(
        arr.astype(jnp.float32))


def pack_params(params):
    """Pack per-layer (w, b) into lane-padded slabs for the kernel.

    params: ((w1, b1), ..., (wL, bL)) with w_i: [in_i, out_i], b_i: [1, out_i]
    returns (w_slab [L,128,128] bf16, b_slab [L,1,128] f32)
    """
    ws, bs = [], []
    for (w, b) in params:
        assert w.shape[0] <= LANE and w.shape[1] <= LANE, (
            f"layer dims {w.shape} exceed lane width {LANE}; this fused "
            f"kernel only supports feature dims <= {LANE}")
        ws.append(_pad_to(w, (LANE, LANE)))
        bs.append(_pad_to(jnp.reshape(b, (1, -1)), (1, LANE)))
    w_slab = jnp.stack(ws).astype(jnp.bfloat16)   # [L, 128, 128] bf16
    b_slab = jnp.stack(bs)                        # [L, 1, 128]   f32
    return w_slab, b_slab


# --------------------------------------------------------------------------
# Kernel
# --------------------------------------------------------------------------
def _make_actor_kernel(num_layers, in_dim):
    def kernel(x_ref, w_ref, b_ref, o_ref):
        """Fused MLP: (Linear+ReLU) x (L-1) -> Linear -> Tanh.

        x_ref: [TM, in_dim] f32  (un-padded features)
        w_ref: [L, 128, 128] bf16 packed weight slab (zero-padded)
        b_ref: [L, 1, 128]   f32  packed bias slab   (zero-padded)
        o_ref: [TM, 128]     bf16 (first output_size lanes are meaningful)
        """
        h = x_ref[...]                                      # f32 [TM, in_dim]
        for l in range(num_layers):                         # static unroll
            lhs = h.astype(jnp.bfloat16)                    # VPU cast
            w = w_ref[l, :in_dim, :] if l == 0 else w_ref[l]
            h = jnp.dot(lhs, w,
                        preferred_element_type=jnp.float32) + b_ref[l]
            if l == num_layers - 1:
                h = jnp.tanh(h)                             # EUP
            else:
                h = jnp.maximum(h, 0.0)                     # VPU
        o_ref[...] = h.astype(o_ref.dtype)                  # bf16 writeback
    return kernel


# --------------------------------------------------------------------------
# Generation-aware batch tiling
# --------------------------------------------------------------------------
def _tensorcores_per_chip():
    try:
        dev = jax.devices()[0]
    except Exception:
        return 1
    n = getattr(dev, "num_cores", None)
    if isinstance(n, int) and n > 0:
        return n
    kind = str(getattr(dev, "device_kind", "")).lower()
    # v7x has 2 TensorCores per chip; v4/v5p megacore also splits parallel axes.
    if "7" in kind or "v4" in kind or "v5p" in kind:
        return 2
    return 1


def _choose_tm(B):
    b8 = pl.cdiv(B, 8) * 8                       # sublane alignment
    if _tensorcores_per_chip() > 1:
        # dual-TC: even grid so both cores get work; cap tile at 512 rows
        half = pl.cdiv(pl.cdiv(b8, 2), 8) * 8
        return max(8, min(half, 512))
    # single TC (v5e/v6e): one big tile for small batches, 512 for huge ones
    return b8 if b8 <= 1024 else 512


# --------------------------------------------------------------------------
# Forward
# --------------------------------------------------------------------------
def actor_forward(x, packed_params, out_dim, *, tm=None):
    """Pallas-backed Actor forward.

    x:             [B, input_size] float32
    packed_params: output of pack_params()
    out_dim:       output_size of the final layer
    returns:       [B, out_dim] float32 (tanh-squashed actions)
    """
    w_slab, b_slab = packed_params
    B, in_dim = x.shape
    assert in_dim <= LANE, f"input_size {in_dim} exceeds lane width {LANE}"
    num_layers = w_slab.shape[0]

    if tm is None:
        tm = _choose_tm(B)
    tm = max(8, min(tm, pl.cdiv(B, 8) * 8))
    bp = pl.cdiv(B, tm) * tm
    if bp != B:                                   # pad batch only if needed
        x = jnp.pad(x, ((0, bp - B), (0, 0)))

    out = pl.pallas_call(
        _make_actor_kernel(num_layers, in_dim),
        out_shape=jax.ShapeDtypeStruct((bp, LANE), jnp.bfloat16),
        grid_spec=pltpu.PrefetchScalarGridSpec(
            num_scalar_prefetch=0,
            grid=(bp // tm,),
            in_specs=[
                # activations: one [TM, in_dim] tile per grid step
                pl.BlockSpec((tm, in_dim), lambda i: (i, 0)),
                # weights / biases: constant index_map -> resident in VMEM,
                # DMA'd once for the whole grid
                pl.BlockSpec((num_layers, LANE, LANE), lambda i: (0, 0, 0)),
                pl.BlockSpec((num_layers, 1, LANE), lambda i: (0, 0, 0)),
            ],
            out_specs=pl.BlockSpec((tm, LANE), lambda i: (i, 0)),
        ),
        compiler_params=pltpu.CompilerParams(
            dimension_semantics=("parallel",)),   # megacore / v7x batch split
    )(x, w_slab, b_slab)

    # slice off batch padding + lane padding; tiny cast back to f32 to match
    # the PyTorch module's output dtype
    return out[:B, :out_dim].astype(jnp.float32)


# --------------------------------------------------------------------------
# Reference + init
# --------------------------------------------------------------------------
def init_params(key, sizes):
    """Deterministic init matching PyTorch nn.Linear's U(-1/sqrt(fan_in), ...)"""
    params = []
    for i in range(len(sizes) - 1):
        fan_in, fan_out = sizes[i], sizes[i + 1]
        key, kw, kb = jax.random.split(key, 3)
        bound = 1.0 / jnp.sqrt(fan_in)
        w = jax.random.uniform(kw, (fan_in, fan_out), jnp.float32,
                               minval=-bound, maxval=bound)
        b = jax.random.uniform(kb, (1, fan_out), jnp.float32,
                               minval=-bound, maxval=bound)
        params.append((w, b))
    return tuple(params)


def actor_ref(x, params):
    """Pure-JAX f32 reference (mirrors the PyTorch module exactly)."""
    h = x
    for i, (w, b) in enumerate(params):
        h = h @ w + b
        h = jnp.tanh(h) if i == len(params) - 1 else jnp.maximum(h, 0.0)
    return h


if __name__ == "__main__":
    # Actor(input_size=16, hidden_sizes=(32, 32), output_size=8), batch=256.
    input_size, hidden_sizes, output_size = 16, (32, 32), 8
    batch = 256
    sizes = [input_size] + list(hidden_sizes) + [output_size]

    key = jax.random.PRNGKey(0)
    key, kx = jax.random.split(key)
    x = jax.random.normal(kx, (batch, input_size), jnp.float32)
    params = init_params(key, sizes)

    packed = pack_params(params)              # one-time packing (hoisted)

    out = actor_forward(x, packed, output_size)
    out = jax.block_until_ready(out)

    ref = actor_ref(x, params)
    assert out.shape == (batch, output_size)
    # bf16 operands + bf16 output (f32 accumulation/epilogue) -> loose tolerance
    assert jnp.allclose(out, ref, atol=3e-2, rtol=1e-2), "mismatch vs JAX ref"

    print("KERNEL_OK")
</pallas_src>

<mosaic_0001>
module attributes {stable_mosaic.version = 11 : i64} {
  func.func @kernel(%arg0: i32, %arg1: memref<256x16xf32, #tpu.memory_space<vmem>>, %arg2: memref<3x128x128xbf16, #tpu.memory_space<vmem>>, %arg3: memref<3x1x128xf32, #tpu.memory_space<vmem>>, %arg4: memref<256x128xbf16, #tpu.memory_space<vmem>>) attributes {dimension_semantics = [#tpu.dimension_semantics<parallel>], iteration_bounds = array<i64: 1>, scalar_prefetch = 0 : i64, scratch_operands = 0 : i64, tpu.core_type = #tpu.core_type<tc>, window_params = [{transform_indices = @transform_0, window_bounds = array<i64: 256, 16>}, {pipeline_mode = #tpu.pipeline_mode<synchronous>, transform_indices = @transform_1, window_bounds = array<i64: 3, 128, 128>}, {pipeline_mode = #tpu.pipeline_mode<synchronous>, transform_indices = @transform_2, window_bounds = array<i64: 3, 1, 128>}, {transform_indices = @transform_3, window_bounds = array<i64: 256, 128>}]} {
    %c0 = arith.constant 0 : index
    %c0_0 = arith.constant 0 : index
    %0 = vector.load %arg1[%c0, %c0_0] : memref<256x16xf32, #tpu.memory_space<vmem>>, vector<256x16xf32>
    %1 = arith.truncf %0 : vector<256x16xf32> to vector<256x16xbf16>
    %c0_1 = arith.constant 0 : index
    %c0_2 = arith.constant 0 : index
    %c0_3 = arith.constant 0 : index
    %2 = vector.load %arg2[%c0_1, %c0_2, %c0_3] : memref<3x128x128xbf16, #tpu.memory_space<vmem>>, vector<1x16x128xbf16>
    %3 = vector.shape_cast %2 : vector<1x16x128xbf16> to vector<16x128xbf16>
    %cst = arith.constant dense<0.000000e+00> : vector<256x128xf32>
    %4 = tpu.matmul %1, %3, %cst {dimension_numbers = #tpu.dot_dimension_numbers<[1], [0], [0], [1], [0, 0, 1, 1], [], []>} : vector<256x16xbf16>, vector<16x128xbf16>, vector<256x128xf32> -> vector<256x128xf32>
    %c0_4 = arith.constant 0 : index
    %c0_5 = arith.constant 0 : index
    %c0_6 = arith.constant 0 : index
    %5 = vector.load %arg3[%c0_4, %c0_5, %c0_6] : memref<3x1x128xf32, #tpu.memory_space<vmem>>, vector<1x1x128xf32>
    %6 = vector.shape_cast %5 : vector<1x1x128xf32> to vector<1x128xf32>
    %7 = vector.broadcast %6 : vector<1x128xf32> to vector<256x128xf32>
    %8 = arith.addf %4, %7 : vector<256x128xf32>
    %cst_7 = arith.constant 0.000000e+00 : f32
    %9 = vector.broadcast %cst_7 : f32 to vector<256x128xf32>
    %10 = arith.maximumf %8, %9 : vector<256x128xf32>
    %11 = arith.truncf %10 : vector<256x128xf32> to vector<256x128xbf16>
    %c1 = arith.constant 1 : index
    %c0_8 = arith.constant 0 : index
    %c0_9 = arith.constant 0 : index
    %12 = vector.load %arg2[%c1, %c0_8, %c0_9] : memref<3x128x128xbf16, #tpu.memory_space<vmem>>, vector<1x128x128xbf16>
    %13 = vector.shape_cast %12 : vector<1x128x128xbf16> to vector<128x128xbf16>
    %cst_10 = arith.constant dense<0.000000e+00> : vector<256x128xf32>
    %14 = tpu.matmul %11, %13, %cst_10 {dimension_numbers = #tpu.dot_dimension_numbers<[1], [0], [0], [1], [0, 0, 1, 1], [], []>} : vector<256x128xbf16>, vector<128x128xbf16>, vector<256x128xf32> -> vector<256x128xf32>
    %c1_11 = arith.constant 1 : index
    %c0_12 = arith.constant 0 : index
    %c0_13 = arith.constant 0 : index
    %15 = vector.load %arg3[%c1_11, %c0_12, %c0_13] : memref<3x1x128xf32, #tpu.memory_space<vmem>>, vector<1x1x128xf32>
    %16 = vector.shape_cast %15 : vector<1x1x128xf32> to vector<1x128xf32>
    %17 = vector.broadcast %16 : vector<1x128xf32> to vector<256x128xf32>
    %18 = arith.addf %14, %17 : vector<256x128xf32>
    %cst_14 = arith.constant 0.000000e+00 : f32
    %19 = vector.broadcast %cst_14 : f32 to vector<256x128xf32>
    %20 = arith.maximumf %18, %19 : vector<256x128xf32>
    %21 = arith.truncf %20 : vector<256x128xf32> to vector<256x128xbf16>
    %c2 = arith.constant 2 : index
    %c0_15 = arith.constant 0 : index
    %c0_16 = arith.constant 0 : index
    %22 = vector.load %arg2[%c2, %c0_15, %c0_16] : memref<3x128x128xbf16, #tpu.memory_space<vmem>>, vector<1x128x128xbf16>
    %23 = vector.shape_cast %22 : vector<1x128x128xbf16> to vector<128x128xbf16>
    %cst_17 = arith.constant dense<0.000000e+00> : vector<256x128xf32>
    %24 = tpu.matmul %21, %23, %cst_17 {dimension_numbers = #tpu.dot_dimension_numbers<[1], [0], [0], [1], [0, 0, 1, 1], [], []>} : vector<256x128xbf16>, vector<128x128xbf16>, vector<256x128xf32> -> vector<256x128xf32>
    %c2_18 = arith.constant 2 : index
    %c0_19 = arith.constant 0 : index
    %c0_20 = arith.constant 0 : index
    %25 = vector.load %arg3[%c2_18, %c0_19, %c0_20] : memref<3x1x128xf32, #tpu.memory_space<vmem>>, vector<1x1x128xf32>
    %26 = vector.shape_cast %25 : vector<1x1x128xf32> to vector<1x128xf32>
    %27 = vector.broadcast %26 : vector<1x128xf32> to vector<256x128xf32>
    %28 = arith.addf %24, %27 : vector<256x128xf32>
    %29 = math.tanh %28 : vector<256x128xf32>
    %30 = arith.truncf %29 : vector<256x128xf32> to vector<256x128xbf16>
    %c0_21 = arith.constant 0 : index
    %c0_22 = arith.constant 0 : index
    %31 = vector.load %arg4[%c0_21, %c0_22] : memref<256x128xbf16, #tpu.memory_space<vmem>>, vector<256x128xbf16>
    tpu.vector_store %arg4[%c0_21, %c0_22], %30 {strides = array<i32>} : memref<256x128xbf16, #tpu.memory_space<vmem>>, vector<256x128xbf16>,
    return
  }
  func.func @transform_0(%arg0: i32) -> (i32, i32) {
    %c0_i32 = arith.constant 0 : i32
    %c0_i32_0 = arith.constant 0 : i32
    return %arg0, %c0_i32 : i32, i32
  }
  func.func @transform_1(%arg0: i32) -> (i32, i32, i32) {
    %c0_i32 = arith.constant 0 : i32
    %c0_i32_0 = arith.constant 0 : i32
    %c0_i32_1 = arith.constant 0 : i32
    %c0_i32_2 = arith.constant 0 : i32
    return %c0_i32, %c0_i32_0, %c0_i32_1 : i32, i32, i32
  }
  func.func @transform_2(%arg0: i32) -> (i32, i32, i32) {
    %c0_i32 = arith.constant 0 : i32
    %c0_i32_0 = arith.constant 0 : i32
    %c0_i32_1 = arith.constant 0 : i32
    %c0_i32_2 = arith.constant 0 : i32
    return %c0_i32, %c0_i32_0, %c0_i32_1 : i32, i32, i32
  }
  func.func @transform_3(%arg0: i32) -> (i32, i32) {
    %c0_i32 = arith.constant 0 : i32
    %c0_i32_0 = arith.constant 0 : i32
    return %arg0, %c0_i32 : i32, i32
  }
}

</mosaic_0001>

<bundles_post_ra>
// kernel: tpu_custom_call.1
= control target key start
LH: loop header
LB: loop body
LE: loop exit
PB: predicated region body
PF: predicated region fallthrough
CT: control target
= control target key end

     0   :  { %vm79_vm0 = vcmask 130048   ;;  %s1910_s0 = inlined_call_operand.vmem [shape: f32[256,16], index: 0, kind: input, shape index: {}]   ;;  %s1911_s1 = inlined_call_operand.vmem [shape: bf16[3,128,128], index: 1, kind: input, shape index: {}]   ;;  %s1912_s2 = inlined_call_operand.vmem [shape: f32[3,1,128], index: 2, kind: input, shape index: {}]   ;;  %s1913_s3 = inlined_call_operand.hbm [shape: bf16[256,128], index: 3, kind: output, shape index: {}]  }
   0x1   :  { %v1490_v0 = vld [vmem:[%s1911_s1] sm:$0xff]   ;;  %v17_v2 = vld [vmem:[%s1910_s0 + $0x8] sm:$0xff]  ;;  %v18_v3 = vld [vmem:[%s1910_s0 + $0x10] sm:$0xff] }
   0x2   :  { %v16_v1 = vld [vmem:[%s1910_s0] sm:$0xff]  ;;  %1355 = vmatprep.subr.bf16.mxu0 %v1490_v0  ;;  %v19_v5 = vld [vmem:[%s1910_s0 + $0x18] sm:$0xff]  ;;  %v21_v7 = vld [vmem:[%s1910_s0 + $0x28] sm:$0xff]  ;;  %1485 = vmatprep.subr.bf16.mxu1 %v1490_v0 }
   0x3   :  { %v48_v4 = vpack.c.bf16 %v17_v2, %v16_v1  ;;  %v20_v6 = vld [vmem:[%s1910_s0 + $0x20] sm:$0xff]  ;;  %1356 = vmatpush3.bf16.msra.mxu0 %v1490_v0  ;;  %v49_v8 = vpack.c.bf16 %v19_v5, %v18_v3  ;;  %1486 = vmatpush3.bf16.msra.mxu1 %v1490_v0  ;;  %v22_v10 = vld [vmem:[%s1910_s0 + $0x30] sm:$0xff]  ;;  %v23_v11 = vld [vmem:[%s1910_s0 + $0x38] sm:$0xff] }
   0x4   :  { %v50_v9 = vpack.c.bf16 %v21_v7, %v20_v6  ;;  %v32_v12 = vld [vmem:[%s1910_s0 + $0x80] sm:$0xff]  ;;  %v33_v13 = vld [vmem:[%s1910_s0 + $0x88] sm:$0xff]  ;;  %v34_v15 = vld [vmem:[%s1910_s0 + $0x90] sm:$0xff]  ;;  %v51_v23 = vpack.c.bf16 %v23_v11, %v22_v10 }
   0x5   :  { %1357 = vmatprep.mubr.msk.bf16.mxu0 %vm79_vm0, %v48_v4  ;;  %v56_v14 = vpack.c.bf16 %v33_v13, %v32_v12  ;;  %v35_v16 = vld [vmem:[%s1910_s0 + $0x98] sm:$0xff]  ;;  %v36_v17 = vld [vmem:[%s1910_s0 + $0xa0] sm:$0xff]  ;;  %v25_v19 = vld [vmem:[%s1910_s0 + $0x48] sm:$0xff] }
   0x6   :  { %1358 = vmatmul.mubr.msk.bf16.vlgmr.msra.gmra.mrb[0].mxu0 %vm79_vm0, %v49_v8  ;;  %v24_v18 = vld [vmem:[%s1910_s0 + $0x40] sm:$0xff]  ;;  %v57_v20 = vpack.c.bf16 %v35_v16, %v34_v15  ;;  %v37_v21 = vld [vmem:[%s1910_s0 + $0xa8] sm:$0xff]  ;;  %v38_v24 = vld [vmem:[%s1910_s0 + $0xb0] sm:$0xff] }
   0x7   :  { %1361 = vmatprep.mubr.msk.bf16.mxu0 %vm79_vm0, %v50_v9  ;;  %1373 = vmatprep.mubr.msk.bf16.mxu1 %vm79_vm0, %v56_v14  ;;  %v58_v22 = vpack.c.bf16 %v37_v21, %v36_v17  ;;  %v39_v25 = vld [vmem:[%s1910_s0 + $0xb8] sm:$0xff]  ;;  %v52_v26 = vpack.c.bf16 %v25_v19, %v24_v18  ;;  %v40_v27 = vld [vmem:[%s1910_s0 + $0xc0] sm:$0xff]  ;;  %v41_v28 = vld [vmem:[%s1910_s0 + $0xc8] sm:$0xff] }
   0x8   :  { %1374 = vmatmul.mubr.msk.bf16.vlgmr.msra.gmra.mrb[0].mxu1 %vm79_vm0, %v57_v20  ;;  %v1491_v29 = vld [vmem:[%s1911_s1 + $0x40] sm:$0xff]   ;;  %v26_v30 = vld [vmem:[%s1910_s0 + $0x50] sm:$0xff]  ;;  %v27_v31 = vld [vmem:[%s1910_s0 + $0x58] sm:$0xff]  ;;  %v59_v34 = vpack.c.bf16 %v39_v25, %v38_v24  ;;  %v60_v36 = vpack.c.bf16 %v41_v28, %v40_v27 }
   0x9   :  { %1377 = vmatprep.mubr.msk.bf16.mxu1 %vm79_vm0, %v58_v22  ;;  %v1492_v32 = vld [vmem:[%s1911_s1 + $0x48] sm:$0xff]   ;;  %v28_v33 = vld [vmem:[%s1910_s0 + $0x60] sm:$0xff]  ;;  %1389 = vmatprep.subr.bf16.mxu1 %v1491_v29  ;;  %v1493_v37 = vld [vmem:[%s1911_s1 + $0x50] sm:$0xff]   ;;  %v53_v40 = vpack.c.bf16 %v27_v31, %v26_v30 }
   0xa   :  { %v29_v35 = vld [vmem:[%s1910_s0 + $0x68] sm:$0xff]  ;;  %1390 = vmatpush3.bf16.msra.mxu1 %v1491_v29  ;;  %v42_v38 = vld [vmem:[%s1910_s0 + $0xd0] sm:$0xff]  ;;  %v43_v39 = vld [vmem:[%s1910_s0 + $0xd8] sm:$0xff] }
   0xb   :  { %1391 = vmatprep.subr.bf16.mxu1 %v1492_v32  ;;  %v44_v41 = vld [vmem:[%s1910_s0 + $0xe0] sm:$0xff]  ;;  %v45_v42 = vld [vmem:[%s1910_s0 + $0xe8] sm:$0xff]  ;;  %v1494_v43 = vld [vmem:[%s1911_s1 + $0x58] sm:$0xff]   ;;  %v54_v44 = vpack.c.bf16 %v29_v35, %v28_v33  ;;  %v61_v47 = vpack.c.bf16 %v43_v39, %v42_v38 }
   0xc   :  { %v30_v45 = vld [vmem:[%s1910_s0 + $0x70] sm:$0xff]  ;;  %v31_v46 = vld [vmem:[%s1910_s0 + $0x78] sm:$0xff]  ;;  %v62_v48 = vpack.c.bf16 %v45_v42, %v44_v41  ;;  %v1495_v49 = vld [vmem:[%s1911_s1 + $0x60] sm:$0xff]  }
   0xe   :  { %1362 = vmatmul.mubr.msk.bf16.gmra.mrb[4].mxu0 %vm79_vm0, %v51_v23  ;;  %1392 = vmatpush3.bf16.msra.mxu1 %v1492_v32 }
   0xf   :  { %1365 = vmatprep.mubr.msk.bf16.mxu0 %vm79_vm0, %v52_v26  ;;  %1393 = vmatprep.subr.bf16.mxu1 %v1493_v37 }
  0x10   :  { %1378 = vmatmul.mubr.msk.bf16.gmra.mrb[4].mxu1 %vm79_vm0, %v59_v34 }
  0x11   :  { %1381 = vmatprep.mubr.msk.bf16.mxu1 %vm79_vm0, %v60_v36 }
  0x12   :  { %1394 = vmatpush3.bf16.msra.mxu1 %v1493_v37 }
  0x13   :  { %1395 = vmatprep.subr.bf16.mxu1 %v1494_v43 }
  0x16   :  { %1366 = vmatmul.mubr.msk.bf16.gmra.mrb[8].mxu0 %vm79_vm0, %v53_v40 }
  0x17   :  { %1369 = vmatprep.mubr.msk.bf16.mxu0 %vm79_vm0, %v54_v44 }
  0x18   :  { %8 = vsyncpa [#allocation3], 0  ;;  %v55_v50 = vpack.c.bf16 %v31_v46, %v30_v45  ;;  %1382 = vmatmul.mubr.msk.bf16.gmra.mrb[8].mxu1 %vm79_vm0, %v61_v47  ;;  %v46_v51 = vld [vmem:[%s1910_s0 + $0xf0] sm:$0xff]  ;;  %v47_v52 = vld [vmem:[%s1910_s0 + $0xf8] sm:$0xff] }
  0x19   :  { %1385 = vmatprep.mubr.msk.bf16.mxu1 %vm79_vm0, %v62_v48  ;;  %1396 = vmatpush3.bf16.msra.mxu1 %v1494_v43  ;;  %v1496_v53 = vld [vmem:[%s1911_s1 + $0x68] sm:$0xff]   ;;  %v63_v54 = vpack.c.bf16 %v47_v52, %v46_v51  ;;  %v1497_v55 = vld [vmem:[%s1911_s1 + $0x70] sm:$0xff]   ;;  %v1498_v56 = vld [vmem:[%s1911_s1 + $0x78] sm:$0xff]  }
  0x1a   :  { %1397 = vmatprep.subr.bf16.mxu1 %v1495_v49  ;;  %v1499_v57 = vld [vmem:[%s1911_s1 + $0x80] sm:$0xff]   ;;  %v1500_v58 = vld [vmem:[%s1911_s1 + $0x88] sm:$0xff]   ;;  %v1501_v59 = vld [vmem:[%s1911_s1 + $0x90] sm:$0xff]  }
  0x1b   :  { %1437 = vmatprep.subr.bf16.mxu0 %v1499_v57  ;;  %v1502_v60 = vld [vmem:[%s1911_s1 + $0x98] sm:$0xff]   ;;  %v1503_v61 = vld [vmem:[%s1911_s1 + $0xa0] sm:$0xff]   ;;  %v1504_v62 = vld [vmem:[%s1911_s1 + $0xa8] sm:$0xff]  }
  0x1c   :  { %1438 = vmatpush3.bf16.msra.mxu0 %v1499_v57  ;;  %v1778_v63 = vld [vmem:[%s1912_s2] ss:$0 sm:$0xff] }
  0x1d   :  { %1398 = vmatpush3.bf16.msra.mxu1 %v1495_v49  ;;  %1439 = vmatprep.subr.bf16.mxu0 %v1500_v58 }
  0x1e   :  { %1370 = vmatmul.mubr.msk.bf16.gmra.mrb[12].mxu0 %vm79_vm0, %v55_v50  ;;  %1399 = vmatprep.subr.bf16.mxu1 %v1496_v53 }
  0x20   :  { %1386 = vmatmul.mubr.msk.bf16.gmra.mrb[12].mxu1 %vm79_vm0, %v63_v54  ;;  %1440 = vmatpush3.bf16.msra.mxu0 %v1500_v58 }
  0x21   :  { %1400 = vmatpush3.bf16.msra.mxu1 %v1496_v53  ;;  %1441 = vmatprep.subr.bf16.mxu0 %v1501_v59 }
  0x22   :  { %1401 = vmatprep.subr.bf16.mxu1 %v1497_v55 }
  0x24   :  { %1442 = vmatpush3.bf16.msra.mxu0 %v1501_v59 }
  0x25   :  { %1402 = vmatpush3.bf16.msra.mxu1 %v1497_v55  ;;  %1443 = vmatprep.subr.bf16.mxu0 %v1502_v60 }
  0x26   :  { %1403 = vmatprep.subr.bf16.mxu1 %v1498_v56 }
  0x28   :  { %1444 = vmatpush3.bf16.msra.mxu0 %v1502_v60 }
  0x29   :  { %1404 = vmatpush3.bf16.msra.mxu1 %v1498_v56  ;;  %1445 = vmatprep.subr.bf16.mxu0 %v1503_v61 }
  0x2c   :  { %1446 = vmatpush3.bf16.msra.mxu0 %v1503_v61 }
  0x2d   :  { %1447 = vmatprep.subr.bf16.mxu0 %v1504_v62 }
  0x30   :  { %1448 = vmatpush3.bf16.msra.mxu0 %v1504_v62 }
  0xd9   :  { %v1359_v0 = vpop.f32.mrb[0].mxu0 }
  0xda   :  { %v171_v1 = vadd.f32 %v1359_v0, %v1778_v63  ;;  %v162_v2 = vpop.f32.mrb[1].mxu0 }
  0xdb   :  { %v163_v3 = vadd.f32 %v1778_v63, %v162_v2  ;;  %v1360_v4 = vpop.f32.mrb[2].mxu0  ;;  %v1375_v8 = vpop.f32.mrb[0].mxu1 }
  0xdc   :  { %v174_v5 = vadd.f32 %v1360_v4, %v1778_v63  ;;  %v165_v6 = vpop.f32.mrb[3].mxu0  ;;  %v291_v9 = vmax.f32 %v171_v1, 0.0  ;;  %v235_v11 = vadd.f32 %v1375_v8, %v1778_v63  ;;  %v226_v12 = vpop.f32.mrb[1].mxu1 }
  0xdd   :  { %v166_v7 = vadd.f32 %v1778_v63, %v165_v6  ;;  %v289_v13 = vmax.f32 %v163_v3, 0.0  ;;  %v227_v15 = vadd.f32 %v1778_v63, %v226_v12  ;;  %v1376_v16 = vpop.f32.mrb[2].mxu1 }
  0xde   :  { %v292_v10 = vmax.f32 %v174_v5, 0.0  ;;  %v307_v18 = vmax.f32 %v235_v11, 0.0  ;;  %v238_v19 = vadd.f32 %v1376_v16, %v1778_v63  ;;  %v229_v20 = vpop.f32.mrb[3].mxu1 }
  0xdf   :  { %v290_v14 = vmax.f32 %v166_v7, 0.0  ;;  %v305_v23 = vmax.f32 %v227_v15, 0.0  ;;  %v230_v24 = vadd.f32 %v1778_v63, %v229_v20 }
  0xe0   :  { %v322_v17 = vpack.c.bf16 %v292_v10, %v291_v9  ;;  %v308_v27 = vmax.f32 %v238_v19, 0.0 }
  0xe1   :  { %v321_v21 = vpack.c.bf16 %v290_v14, %v289_v13  ;;  %v1363_v22 = vpop.f32.mrb[4].mxu0  ;;  %v306_v30 = vmax.f32 %v230_v24, 0.0 }
  0xe2   :  { %v187_v25 = vadd.f32 %v1363_v22, %v1778_v63  ;;  %v178_v26 = vpop.f32.mrb[5].mxu0  ;;  %v1791_v33 = vpack.c.bf16 %v308_v27, %v307_v18 }
  0xe3   :  { %v179_v28 = vadd.f32 %v1778_v63, %v178_v26  ;;  %v1364_v29 = vpop.f32.mrb[6].mxu0  ;;  %1405 = vmatprep.mubr.bf16.mxu1 %v321_v21  ;;  %v1794_v35 = vpack.c.bf16 %v306_v30, %v305_v23  ;;  %v1379_v36 = vpop.f32.mrb[4].mxu1 }
  0xe4   :  { %v190_v31 = vadd.f32 %v1364_v29, %v1778_v63  ;;  %v181_v32 = vpop.f32.mrb[7].mxu0  ;;  %1406 = vmatmul.mubr.bf16.vlgmr.msra.gmra.mrb[16].mxu1 %v322_v17  ;;  %v295_v37 = vmax.f32 %v187_v25, 0.0  ;;  %v251_v39 = vadd.f32 %v1379_v36, %v1778_v63  ;;  %v242_v40 = vpop.f32.mrb[5].mxu1 }
  0xe5   :  { %v182_v34 = vadd.f32 %v1778_v63, %v181_v32  ;;  %v293_v41 = vmax.f32 %v179_v28, 0.0  ;;  %v243_v43 = vadd.f32 %v1778_v63, %v242_v40  ;;  %v1380_v44 = vpop.f32.mrb[6].mxu1 }
  0xe6   :  { %v296_v38 = vmax.f32 %v190_v31, 0.0  ;;  %v311_v46 = vmax.f32 %v251_v39, 0.0  ;;  %v254_v47 = vadd.f32 %v1380_v44, %v1778_v63  ;;  %v245_v48 = vpop.f32.mrb[7].mxu1 }
  0xe7   :  { %v294_v42 = vmax.f32 %v182_v34, 0.0  ;;  %v309_v51 = vmax.f32 %v243_v43, 0.0  ;;  %v246_v52 = vadd.f32 %v1778_v63, %v245_v48 }
  0xe8   :  { %v324_v45 = vpack.c.bf16 %v296_v38, %v295_v37  ;;  %v312_v55 = vmax.f32 %v254_v47, 0.0 }
  0xe9   :  { %v323_v49 = vpack.c.bf16 %v294_v42, %v293_v41  ;;  %v1367_v50 = vpop.f32.mrb[8].mxu0  ;;  %v310_v58 = vmax.f32 %v246_v52, 0.0 }
  0xea   :  { %v203_v53 = vadd.f32 %v1367_v50, %v1778_v63  ;;  %v194_v54 = vpop.f32.mrb[9].mxu0  ;;  %v332_v61 = vpack.c.bf16 %v312_v55, %v311_v46 }
  0xeb   :  { %v195_v56 = vadd.f32 %v1778_v63, %v194_v54  ;;  %v1368_v57 = vpop.f32.mrb[10].mxu0  ;;  %1409 = vmatprep.mubr.bf16.mxu1 %v323_v49  ;;  %v331_v0 = vpack.c.bf16 %v310_v58, %v309_v51  ;;  %v1383_v1 = vpop.f32.mrb[8].mxu1  ;;  %v1506_v51 = vld [vmem:[%s1911_s1 + $0xb8] sm:$0xff]  }
  0xec   :  { %v206_v59 = vadd.f32 %v1368_v57, %v1778_v63  ;;  %v197_v60 = vpop.f32.mrb[11].mxu0  ;;  %1410 = vmatmul.mubr.bf16.gmra.mrb[20].mxu1 %v324_v45  ;;  %v299_v2 = vmax.f32 %v203_v53, 0.0  ;;  %v267_v4 = vadd.f32 %v1383_v1, %v1778_v63  ;;  %v258_v5 = vpop.f32.mrb[9].mxu1 }
  0xed   :  { %v198_v62 = vadd.f32 %v1778_v63, %v197_v60  ;;  %v297_v6 = vmax.f32 %v195_v56, 0.0  ;;  %v259_v8 = vadd.f32 %v1778_v63, %v258_v5  ;;  %v1384_v9 = vpop.f32.mrb[10].mxu1 }
  0xee   :  { %v300_v3 = vmax.f32 %v206_v59, 0.0  ;;  %v315_v11 = vmax.f32 %v267_v4, 0.0  ;;  %v270_v12 = vadd.f32 %v1384_v9, %v1778_v63  ;;  %v261_v13 = vpop.f32.mrb[11].mxu1 }
  0xef   :  { %v298_v7 = vmax.f32 %v198_v62, 0.0  ;;  %v313_v16 = vmax.f32 %v259_v8, 0.0  ;;  %v262_v17 = vadd.f32 %v1778_v63, %v261_v13 }
  0xf0   :  { %v326_v10 = vpack.c.bf16 %v300_v3, %v299_v2  ;;  %v316_v20 = vmax.f32 %v270_v12, 0.0 }
  0xf1   :  { %v325_v14 = vpack.c.bf16 %v298_v7, %v297_v6  ;;  %v1371_v15 = vpop.f32.mrb[12].mxu0  ;;  %v314_v23 = vmax.f32 %v262_v17, 0.0 }
  0xf2   :  { %v219_v18 = vadd.f32 %v1371_v15, %v1778_v63  ;;  %v210_v19 = vpop.f32.mrb[13].mxu0  ;;  %v334_v26 = vpack.c.bf16 %v316_v20, %v315_v11 }
  0xf3   :  { %v211_v21 = vadd.f32 %v1778_v63, %v210_v19  ;;  %v1372_v22 = vpop.f32.mrb[14].mxu0  ;;  %1413 = vmatprep.mubr.bf16.mxu1 %v325_v14  ;;  %v333_v28 = vpack.c.bf16 %v314_v23, %v313_v16  ;;  %v1387_v29 = vpop.f32.mrb[12].mxu1 }
  0xf4   :  { %v222_v24 = vadd.f32 %v1372_v22, %v1778_v63  ;;  %v213_v25 = vpop.f32.mrb[15].mxu0  ;;  %1414 = vmatmul.mubr.bf16.gmra.mrb[24].mxu1 %v326_v10  ;;  %v303_v30 = vmax.f32 %v219_v18, 0.0  ;;  %v283_v32 = vadd.f32 %v1387_v29, %v1778_v63  ;;  %v274_v34 = vpop.f32.mrb[13].mxu1 }
  0xf5   :  { %v214_v27 = vadd.f32 %v1778_v63, %v213_v25  ;;  %v301_v36 = vmax.f32 %v211_v21, 0.0  ;;  %v275_v38 = vadd.f32 %v1778_v63, %v274_v34  ;;  %v1388_v39 = vpop.f32.mrb[14].mxu1 }
  0xf6   :  { %v304_v31 = vmax.f32 %v222_v24, 0.0  ;;  %v319_v41 = vmax.f32 %v283_v32, 0.0  ;;  %v286_v42 = vadd.f32 %v1388_v39, %v1778_v63  ;;  %v277_v43 = vpop.f32.mrb[15].mxu1 }
  0xf7   :  { %v302_v37 = vmax.f32 %v214_v27, 0.0  ;;  %v317_v45 = vmax.f32 %v275_v38, 0.0  ;;  %v278_v46 = vadd.f32 %v1778_v63, %v277_v43  ;;  %v1505_v63 = vld [vmem:[%s1911_s1 + $0xb0] sm:$0xff]  }
  0xf8   :  { %v328_v40 = vpack.c.bf16 %v304_v31, %v303_v30  ;;  %v320_v47 = vmax.f32 %v286_v42, 0.0  ;;  %1449 = vmatprep.subr.bf16.mxu0 %v1505_v63 }
  0xf9   :  { %v327_v44 = vpack.c.bf16 %v302_v37, %v301_v36  ;;  %v318_v48 = vmax.f32 %v278_v46, 0.0  ;;  %1450 = vmatpush3.bf16.msra.mxu0 %v1505_v63 }
  0xfa   :  { %v336_v49 = vpack.c.bf16 %v320_v47, %v319_v41  ;;  %1451 = vmatprep.subr.bf16.mxu0 %v1506_v51 }
  0xfb   :  { %1417 = vmatprep.mubr.bf16.mxu1 %v327_v44  ;;  %v335_v50 = vpack.c.bf16 %v318_v48, %v317_v45 }
  0xfc   :  { %1418 = vmatmul.mubr.bf16.gmra.mrb[28].mxu1 %v328_v40 }
  0xfd   :  { %1421 = vmatprep.mubr.bf16.mxu1 %v1794_v35  ;;  %1452 = vmatpush3.bf16.msra.mxu0 %v1506_v51 }
 0x104   :  { %1422 = vmatmul.mubr.bf16.gmra.mrb[32].mxu1 %v1791_v33  ;;  %v1827_v33 = vld [vmem:[%s1912_s2 + $0x1] ss:$0 sm:$0xff] }
 0x105   :  { %1425 = vmatprep.mubr.bf16.mxu1 %v331_v0 }
 0x10c   :  { %1426 = vmatmul.mubr.bf16.gmra.mrb[36].mxu1 %v332_v61 }
 0x10d   :  { %1429 = vmatprep.mubr.bf16.mxu1 %v333_v28 }
 0x114   :  { %1430 = vmatmul.mubr.bf16.gmra.mrb[40].mxu1 %v334_v26 }
 0x115   :  { %1433 = vmatprep.mubr.bf16.mxu1 %v335_v50 }
 0x11c   :  { %1434 = vmatmul.mubr.bf16.gmra.mrb[44].mxu1 %v336_v49 }
 0x1b7   :  { %v1407_v35 = vpop.f32.mrb[16].mxu1 }
 0x1b8   :  { %v453_v52 = vadd.f32 %v1407_v35, %v1827_v33  ;;  %v444_v53 = vpop.f32.mrb[17].mxu1 }
 0x1b9   :  { %v445_v54 = vadd.f32 %v1827_v33, %v444_v53  ;;  %v1408_v55 = vpop.f32.mrb[18].mxu1 }
 0x1ba   :  { %v456_v56 = vadd.f32 %v1408_v55, %v1827_v33  ;;  %v447_v57 = vpop.f32.mrb[19].mxu1  ;;  %v573_v59 = vmax.f32 %v453_v52, 0.0 }
 0x1bb   :  { %v448_v58 = vadd.f32 %v1827_v33, %v447_v57  ;;  %v571_v61 = vmax.f32 %v445_v54, 0.0 }
 0x1bc   :  { %v574_v60 = vmax.f32 %v456_v56, 0.0 }
 0x1bd   :  { %v572_v62 = vmax.f32 %v448_v58, 0.0 }
 0x1be   :  { %v604_v0 = vpack.c.bf16 %v574_v60, %v573_v59 }
 0x1bf   :  { %v603_v1 = vpack.c.bf16 %v572_v62, %v571_v61  ;;  %v1411_v2 = vpop.f32.mrb[20].mxu1 }
 0x1c0   :  { %v469_v3 = vadd.f32 %v1411_v2, %v1827_v33  ;;  %v460_v4 = vpop.f32.mrb[21].mxu1 }
 0x1c1   :  { %v461_v5 = vadd.f32 %v1827_v33, %v460_v4  ;;  %v1412_v6 = vpop.f32.mrb[22].mxu1  ;;  %1453 = vmatprep.mubr.bf16.mxu0 %v603_v1 }
 0x1c2   :  { %v472_v7 = vadd.f32 %v1412_v6, %v1827_v33  ;;  %v463_v8 = vpop.f32.mrb[23].mxu1  ;;  %1454 = vmatmul.mubr.bf16.vlgmr.msra.gmra.mrb[16].mxu0 %v604_v0  ;;  %v577_v10 = vmax.f32 %v469_v3, 0.0 }
 0x1c3   :  { %v464_v9 = vadd.f32 %v1827_v33, %v463_v8  ;;  %v575_v12 = vmax.f32 %v461_v5, 0.0 }
 0x1c4   :  { %v578_v11 = vmax.f32 %v472_v7, 0.0 }
 0x1c5   :  { %v576_v13 = vmax.f32 %v464_v9, 0.0 }
 0x1c6   :  { %v606_v14 = vpack.c.bf16 %v578_v11, %v577_v10 }
 0x1c7   :  { %v605_v15 = vpack.c.bf16 %v576_v13, %v575_v12  ;;  %v1415_v16 = vpop.f32.mrb[24].mxu1 }
 0x1c8   :  { %v485_v17 = vadd.f32 %v1415_v16, %v1827_v33  ;;  %v476_v18 = vpop.f32.mrb[25].mxu1 }
 0x1c9   :  { %v477_v19 = vadd.f32 %v1827_v33, %v476_v18  ;;  %v1416_v20 = vpop.f32.mrb[26].mxu1  ;;  %1457 = vmatprep.mubr.bf16.mxu0 %v605_v15 }
 0x1ca   :  { %v488_v21 = vadd.f32 %v1416_v20, %v1827_v33  ;;  %v479_v22 = vpop.f32.mrb[27].mxu1  ;;  %1458 = vmatmul.mubr.bf16.gmra.mrb[20].mxu0 %v606_v14  ;;  %v581_v24 = vmax.f32 %v485_v17, 0.0 }
 0x1cb   :  { %v480_v23 = vadd.f32 %v1827_v33, %v479_v22  ;;  %v579_v26 = vmax.f32 %v477_v19, 0.0 }
 0x1cc   :  { %v582_v25 = vmax.f32 %v488_v21, 0.0 }
 0x1cd   :  { %v580_v27 = vmax.f32 %v480_v23, 0.0 }
 0x1ce   :  { %v608_v28 = vpack.c.bf16 %v582_v25, %v581_v24 }
 0x1cf   :  { %v607_v29 = vpack.c.bf16 %v580_v27, %v579_v26  ;;  %v1419_v30 = vpop.f32.mrb[28].mxu1 }
 0x1d0   :  { %v501_v31 = vadd.f32 %v1419_v30, %v1827_v33  ;;  %v492_v32 = vpop.f32.mrb[29].mxu1 }
 0x1d1   :  { %v493_v34 = vadd.f32 %v1827_v33, %v492_v32  ;;  %v1420_v36 = vpop.f32.mrb[30].mxu1  ;;  %1461 = vmatprep.mubr.bf16.mxu0 %v607_v29 }
 0x1d2   :  { %v504_v37 = vadd.f32 %v1420_v36, %v1827_v33  ;;  %v495_v38 = vpop.f32.mrb[31].mxu1  ;;  %1462 = vmatmul.mubr.bf16.gmra.mrb[24].mxu0 %v608_v28  ;;  %v585_v40 = vmax.f32 %v501_v31, 0.0 }
 0x1d3   :  { %v496_v39 = vadd.f32 %v1827_v33, %v495_v38  ;;  %v583_v42 = vmax.f32 %v493_v34, 0.0 }
 0x1d4   :  { %v586_v41 = vmax.f32 %v504_v37, 0.0 }
 0x1d5   :  { %v584_v43 = vmax.f32 %v496_v39, 0.0  ;;  %v1864_v39 = vld [vmem:[%s1912_s2 + $0x2] ss:$0 sm:$0xff]  ;;  %s1595_s2 = smov [#allocation2]  }
 0x1d6   :  { %v610_v44 = vpack.c.bf16 %v586_v41, %v585_v40  ;;  %s1050_s6 = sshll.u32 %s1595_s2, 4  ;;  %s1051_s6 = int_to_ptr.vmem [resolvable:$true] %s1050_s6 }
 0x1d7   :  { %v609_v45 = vpack.c.bf16 %v584_v43, %v583_v42  ;;  %v1423_v46 = vpop.f32.mrb[32].mxu1  ;;  %s1571_s7 = scalar_lea.vmem %s1051_s6, 2048  ;;  %p1576_p1 = scmp.lt.s32.totalorder %s1051_s6, %s1051_s6 }
 0x1d8   :  { %v517_v47 = vadd.f32 %v1423_v46, %v1827_v33  ;;  %v508_v48 = vpop.f32.mrb[33].mxu1  ;;  %p1572_p0 = scmp.ne.s32.totalorder %s1051_s6, %s1571_s7  ;;  %p1577_p2 = scmp.lt.s32.totalorder %s1571_s7, %s1571_s7 }
 0x1d9   :  { %v509_v49 = vadd.f32 %v1827_v33, %v508_v48  ;;  %v1424_v50 = vpop.f32.mrb[34].mxu1  ;;  %1465 = vmatprep.mubr.bf16.mxu0 %v609_v45 }
 0x1da   :  { %v520_v63 = vadd.f32 %v1424_v50, %v1827_v33  ;;  %v511_v51 = vpop.f32.mrb[35].mxu1  ;;  %1466 = vmatmul.mubr.bf16.gmra.mrb[28].mxu0 %v610_v44  ;;  %v589_v52 = vmax.f32 %v517_v47, 0.0  ;;  %p1578_p3 = por %p1577_p2, %p1576_p1 }
 0x1db   :  { %v512_v35 = vadd.f32 %v1827_v33, %v511_v51  ;;  %v587_v54 = vmax.f32 %v509_v49, 0.0 }
 0x1dc   :  { %v590_v53 = vmax.f32 %v520_v63, 0.0  ;;  %p1579_p4 = pnand %p1578_p3, %p1572_p0 }
 0x1dd   :  { %v588_v55 = vmax.f32 %v512_v35, 0.0 }
 0x1de   :  { %v612_v56 = vpack.c.bf16 %v590_v53, %v589_v52 }
 0x1df   :  { %v611_v57 = vpack.c.bf16 %v588_v55, %v587_v54  ;;  %v1427_v58 = vpop.f32.mrb[36].mxu1 }
 0x1e0   :  { %v533_v59 = vadd.f32 %v1427_v58, %v1827_v33  ;;  %v524_v60 = vpop.f32.mrb[37].mxu1 }
 0x1e1   :  { %v525_v61 = vadd.f32 %v1827_v33, %v524_v60  ;;  %v1428_v62 = vpop.f32.mrb[38].mxu1  ;;  %1469 = vmatprep.mubr.bf16.mxu0 %v611_v57 }
 0x1e2   :  { %v536_v0 = vadd.f32 %v1428_v62, %v1827_v33  ;;  %v527_v1 = vpop.f32.mrb[39].mxu1  ;;  %1470 = vmatmul.mubr.bf16.gmra.mrb[32].mxu0 %v612_v56  ;;  %v593_v3 = vmax.f32 %v533_v59, 0.0 }
 0x1e3   :  { %v528_v2 = vadd.f32 %v1827_v33, %v527_v1  ;;  %v591_v5 = vmax.f32 %v525_v61, 0.0 }
 0x1e4   :  { %v594_v4 = vmax.f32 %v536_v0, 0.0 }
 0x1e5   :  { %v592_v6 = vmax.f32 %v528_v2, 0.0 }
 0x1e6   :  { %v614_v7 = vpack.c.bf16 %v594_v4, %v593_v3 }
 0x1e7   :  { %v613_v8 = vpack.c.bf16 %v592_v6, %v591_v5  ;;  %v1431_v9 = vpop.f32.mrb[40].mxu1 }
 0x1e8   :  { %v549_v10 = vadd.f32 %v1431_v9, %v1827_v33  ;;  %v540_v11 = vpop.f32.mrb[41].mxu1 }
 0x1e9   :  { %v541_v12 = vadd.f32 %v1827_v33, %v540_v11  ;;  %v1432_v13 = vpop.f32.mrb[42].mxu1  ;;  %1473 = vmatprep.mubr.bf16.mxu0 %v613_v8 }
 0x1ea   :  { %v552_v14 = vadd.f32 %v1432_v13, %v1827_v33  ;;  %v543_v15 = vpop.f32.mrb[43].mxu1  ;;  %1474 = vmatmul.mubr.bf16.gmra.mrb[36].mxu0 %v614_v7  ;;  %v597_v17 = vmax.f32 %v549_v10, 0.0 }
 0x1eb   :  { %v544_v16 = vadd.f32 %v1827_v33, %v543_v15  ;;  %v595_v19 = vmax.f32 %v541_v12, 0.0 }
 0x1ec   :  { %v598_v18 = vmax.f32 %v552_v14, 0.0 }
 0x1ed   :  { %v596_v20 = vmax.f32 %v544_v16, 0.0 }
 0x1ee   :  { %v616_v21 = vpack.c.bf16 %v598_v18, %v597_v17 }
 0x1ef   :  { %v615_v22 = vpack.c.bf16 %v596_v20, %v595_v19  ;;  %v1435_v23 = vpop.f32.mrb[44].mxu1 }
 0x1f0   :  { %v565_v24 = vadd.f32 %v1435_v23, %v1827_v33  ;;  %v556_v25 = vpop.f32.mrb[45].mxu1 }
 0x1f1   :  { %v557_v26 = vadd.f32 %v1827_v33, %v556_v25  ;;  %v1436_v27 = vpop.f32.mrb[46].mxu1  ;;  %1477 = vmatprep.mubr.bf16.mxu0 %v615_v22 }
 0x1f2   :  { %v568_v28 = vadd.f32 %v1436_v27, %v1827_v33  ;;  %v559_v29 = vpop.f32.mrb[47].mxu1  ;;  %1478 = vmatmul.mubr.bf16.gmra.mrb[40].mxu0 %v616_v21  ;;  %v601_v31 = vmax.f32 %v565_v24, 0.0 }
 0x1f3   :  { %v560_v30 = vadd.f32 %v1827_v33, %v559_v29  ;;  %v599_v34 = vmax.f32 %v557_v26, 0.0 }
 0x1f4   :  { %v602_v32 = vmax.f32 %v568_v28, 0.0 }
 0x1f5   :  { %v600_v36 = vmax.f32 %v560_v30, 0.0 }
 0x1f6   :  { %v618_v37 = vpack.c.bf16 %v602_v32, %v601_v31 }
 0x1f7   :  { %v617_v38 = vpack.c.bf16 %v600_v36, %v599_v34 }
 0x1f9   :  { %1481 = vmatprep.mubr.bf16.mxu0 %v617_v38 }
 0x1fa   :  { %1482 = vmatmul.mubr.bf16.gmra.mrb[44].mxu0 %v618_v37 }
 0x295   :  { %v1455_v40 = vpop.f32.mrb[16].mxu0 }
 0x296   :  { %v735_v41 = vadd.f32 %v1455_v40, %v1864_v39  ;;  %v726_v42 = vpop.f32.mrb[17].mxu0 }
 0x297   :  { %v727_v43 = vadd.f32 %v1864_v39, %v726_v42  ;;  %v1456_v33 = vpop.f32.mrb[18].mxu0 }
 0x298   :  { %1507 = vtanh.f32 %v735_v41  ;;  %v738_v44 = vadd.f32 %v1456_v33, %v1864_v39  ;;  %v729_v45 = vpop.f32.mrb[19].mxu0 }
 0x299   :  { %1509 = vtanh.f32 %v727_v43  ;;  %v730_v46 = vadd.f32 %v1864_v39, %v729_v45 }
 0x29a   :  { %1511 = vtanh.f32 %v738_v44 }
 0x29b   :  { %1513 = vtanh.f32 %v730_v46 }
 0x29d   :  { %v1459_v47 = vpop.f32.mrb[20].mxu0 }
 0x29e   :  { %v751_v48 = vadd.f32 %v1459_v47, %v1864_v39  ;;  %v742_v49 = vpop.f32.mrb[21].mxu0 }
 0x29f   :  { %v743_v50 = vadd.f32 %v1864_v39, %v742_v49  ;;  %v1460_v63 = vpop.f32.mrb[22].mxu0 }
 0x2a0   :  { %1515 = vtanh.f32 %v751_v48  ;;  %v754_v51 = vadd.f32 %v1460_v63, %v1864_v39  ;;  %v745_v35 = vpop.f32.mrb[23].mxu0 }
 0x2a1   :  { %1517 = vtanh.f32 %v743_v50  ;;  %v746_v52 = vadd.f32 %v1864_v39, %v745_v35 }
 0x2a2   :  { %v1508_v53 = vpop.eup %1507  ;;  %1519 = vtanh.f32 %v754_v51 }
 0x2a3   :  { %v1510_v54 = vpop.eup %1509  ;;  %1521 = vtanh.f32 %v746_v52 }
 0x2a4   :  { %v1512_v55 = vpop.eup %1511 }
 0x2a5   :  { %v1514_v56 = vpop.eup %1513  ;;  %v1203_v57 = vpack.c.bf16 %v1512_v55, %v1508_v53  ;;  %v1463_v58 = vpop.f32.mrb[24].mxu0 }
 0x2a6   :  { %v1198_v59 = vpack.c.bf16 %v1514_v56, %v1510_v54  ;;  %v767_v60 = vadd.f32 %v1463_v58, %v1864_v39  ;;  %v758_v61 = vpop.f32.mrb[25].mxu0 }
 0x2a7   :  { %1275 = vst [vmem:[#allocation2 + $0x8] sm:$0xff] %v1203_v57   ;;  %v759_v62 = vadd.f32 %v1864_v39, %v758_v61  ;;  %v1464_v0 = vpop.f32.mrb[26].mxu0 }
 0x2a8   :  { %1199 = vst [vmem:[#allocation2] sm:$0xff] %v1198_v59   ;;  %1523 = vtanh.f32 %v767_v60  ;;  %v770_v1 = vadd.f32 %v1464_v0, %v1864_v39  ;;  %v761_v2 = vpop.f32.mrb[27].mxu0 }
 0x2a9   :  { %1525 = vtanh.f32 %v759_v62  ;;  %v762_v3 = vadd.f32 %v1864_v39, %v761_v2 }
 0x2aa   :  { %v1516_v4 = vpop.eup %1515  ;;  %1527 = vtanh.f32 %v770_v1 }
 0x2ab   :  { %v1518_v5 = vpop.eup %1517  ;;  %1529 = vtanh.f32 %v762_v3 }
 0x2ac   :  { %v1520_v6 = vpop.eup %1519 }
 0x2ad   :  { %v1522_v7 = vpop.eup %1521  ;;  %v1213_v8 = vpack.c.bf16 %v1520_v6, %v1516_v4  ;;  %v1467_v9 = vpop.f32.mrb[28].mxu0 }
 0x2ae   :  { %v1208_v10 = vpack.c.bf16 %v1522_v7, %v1518_v5  ;;  %v783_v11 = vadd.f32 %v1467_v9, %v1864_v39  ;;  %v774_v12 = vpop.f32.mrb[29].mxu0 }
 0x2af   :  { %1277 = vst [vmem:[#allocation2 + $0x18] sm:$0xff] %v1213_v8   ;;  %v775_v13 = vadd.f32 %v1864_v39, %v774_v12  ;;  %v1468_v14 = vpop.f32.mrb[30].mxu0 }
 0x2b0   :  { %1276 = vst [vmem:[#allocation2 + $0x10] sm:$0xff] %v1208_v10   ;;  %1531 = vtanh.f32 %v783_v11  ;;  %v786_v15 = vadd.f32 %v1468_v14, %v1864_v39  ;;  %v777_v16 = vpop.f32.mrb[31].mxu0 }
 0x2b1   :  { %1533 = vtanh.f32 %v775_v13  ;;  %v778_v17 = vadd.f32 %v1864_v39, %v777_v16 }
 0x2b2   :  { %v1524_v18 = vpop.eup %1523  ;;  %1535 = vtanh.f32 %v786_v15 }
 0x2b3   :  { %v1526_v19 = vpop.eup %1525  ;;  %1537 = vtanh.f32 %v778_v17 }
 0x2b4   :  { %v1528_v20 = vpop.eup %1527 }
 0x2b5   :  { %v1530_v21 = vpop.eup %1529  ;;  %v1223_v22 = vpack.c.bf16 %v1528_v20, %v1524_v18  ;;  %v1471_v23 = vpop.f32.mrb[32].mxu0 }
 0x2b6   :  { %v1218_v24 = vpack.c.bf16 %v1530_v21, %v1526_v19  ;;  %v799_v25 = vadd.f32 %v1471_v23, %v1864_v39  ;;  %v790_v26 = vpop.f32.mrb[33].mxu0 }
 0x2b7   :  { %1279 = vst [vmem:[#allocation2 + $0x28] sm:$0xff] %v1223_v22   ;;  %v791_v27 = vadd.f32 %v1864_v39, %v790_v26  ;;  %v1472_v28 = vpop.f32.mrb[34].mxu0 }
 0x2b8   :  { %1278 = vst [vmem:[#allocation2 + $0x20] sm:$0xff] %v1218_v24   ;;  %1539 = vtanh.f32 %v799_v25  ;;  %v802_v29 = vadd.f32 %v1472_v28, %v1864_v39  ;;  %v793_v30 = vpop.f32.mrb[35].mxu0 }
 0x2b9   :  { %1541 = vtanh.f32 %v791_v27  ;;  %v794_v31 = vadd.f32 %v1864_v39, %v793_v30 }
 0x2ba   :  { %v1532_v32 = vpop.eup %1531  ;;  %1543 = vtanh.f32 %v802_v29 }
 0x2bb   :  { %v1534_v34 = vpop.eup %1533  ;;  %1545 = vtanh.f32 %v794_v31 }
 0x2bc   :  { %v1536_v36 = vpop.eup %1535 }
 0x2bd   :  { %v1538_v37 = vpop.eup %1537  ;;  %v1233_v38 = vpack.c.bf16 %v1536_v36, %v1532_v32  ;;  %v1475_v40 = vpop.f32.mrb[36].mxu0 }
 0x2be   :  { %v1228_v41 = vpack.c.bf16 %v1538_v37, %v1534_v34  ;;  %v815_v42 = vadd.f32 %v1475_v40, %v1864_v39  ;;  %v806_v43 = vpop.f32.mrb[37].mxu0 }
 0x2bf   :  { %1281 = vst [vmem:[#allocation2 + $0x38] sm:$0xff] %v1233_v38   ;;  %v807_v33 = vadd.f32 %v1864_v39, %v806_v43  ;;  %v1476_v44 = vpop.f32.mrb[38].mxu0 }
 0x2c0   :  { %1280 = vst [vmem:[#allocation2 + $0x30] sm:$0xff] %v1228_v41   ;;  %1547 = vtanh.f32 %v815_v42  ;;  %v818_v45 = vadd.f32 %v1476_v44, %v1864_v39  ;;  %v809_v46 = vpop.f32.mrb[39].mxu0 }
 0x2c1   :  { %1549 = vtanh.f32 %v807_v33  ;;  %v810_v47 = vadd.f32 %v1864_v39, %v809_v46 }
 0x2c2   :  { %v1540_v48 = vpop.eup %1539  ;;  %1551 = vtanh.f32 %v818_v45 }
 0x2c3   :  { %v1542_v49 = vpop.eup %1541  ;;  %1553 = vtanh.f32 %v810_v47 }
 0x2c4   :  { %v1544_v50 = vpop.eup %1543 }
 0x2c5   :  { %v1546_v63 = vpop.eup %1545  ;;  %v1243_v51 = vpack.c.bf16 %v1544_v50, %v1540_v48  ;;  %v1479_v35 = vpop.f32.mrb[40].mxu0 }
 0x2c6   :  { %v1238_v52 = vpack.c.bf16 %v1546_v63, %v1542_v49  ;;  %v831_v53 = vadd.f32 %v1479_v35, %v1864_v39  ;;  %v822_v54 = vpop.f32.mrb[41].mxu0 }
 0x2c7   :  { %1283 = vst [vmem:[#allocation2 + $0x48] sm:$0xff] %v1243_v51   ;;  %v823_v55 = vadd.f32 %v1864_v39, %v822_v54  ;;  %v1480_v56 = vpop.f32.mrb[42].mxu0 }
 0x2c8   :  { %1282 = vst [vmem:[#allocation2 + $0x40] sm:$0xff] %v1238_v52   ;;  %1555 = vtanh.f32 %v831_v53  ;;  %v834_v57 = vadd.f32 %v1480_v56, %v1864_v39  ;;  %v825_v58 = vpop.f32.mrb[43].mxu0 }
 0x2c9   :  { %1557 = vtanh.f32 %v823_v55  ;;  %v826_v59 = vadd.f32 %v1864_v39, %v825_v58 }
 0x2ca   :  { %v1548_v60 = vpop.eup %1547  ;;  %1559 = vtanh.f32 %v834_v57 }
 0x2cb   :  { %v1550_v61 = vpop.eup %1549  ;;  %1561 = vtanh.f32 %v826_v59 }
 0x2cc   :  { %v1552_v62 = vpop.eup %1551 }
 0x2cd   :  { %v1554_v0 = vpop.eup %1553  ;;  %v1253_v1 = vpack.c.bf16 %v1552_v62, %v1548_v60  ;;  %v1483_v2 = vpop.f32.mrb[44].mxu0 }
 0x2ce   :  { %v1248_v3 = vpack.c.bf16 %v1554_v0, %v1550_v61  ;;  %v847_v4 = vadd.f32 %v1483_v2, %v1864_v39  ;;  %v838_v5 = vpop.f32.mrb[45].mxu0 }
 0x2cf   :  { %1285 = vst [vmem:[#allocation2 + $0x58] sm:$0xff] %v1253_v1   ;;  %v839_v6 = vadd.f32 %v1864_v39, %v838_v5  ;;  %v1484_v7 = vpop.f32.mrb[46].mxu0 }
 0x2d0   :  { %1284 = vst [vmem:[#allocation2 + $0x50] sm:$0xff] %v1248_v3   ;;  %1563 = vtanh.f32 %v847_v4  ;;  %v850_v8 = vadd.f32 %v1484_v7, %v1864_v39  ;;  %v841_v9 = vpop.f32.mrb[47].mxu0 }
 0x2d1   :  { %1565 = vtanh.f32 %v839_v6  ;;  %v842_v10 = vadd.f32 %v1864_v39, %v841_v9 }
 0x2d2   :  { %v1556_v11 = vpop.eup %1555  ;;  %1567 = vtanh.f32 %v850_v8 }
 0x2d3   :  { %v1558_v12 = vpop.eup %1557  ;;  %1569 = vtanh.f32 %v842_v10 }
 0x2d4   :  { %v1560_v13 = vpop.eup %1559 }
 0x2d5   :  { %v1562_v14 = vpop.eup %1561  ;;  %v1263_v15 = vpack.c.bf16 %v1560_v13, %v1556_v11 }
 0x2d6   :  { %v1258_v16 = vpack.c.bf16 %v1562_v14, %v1558_v12 }
 0x2d7   :  { %1287 = vst [vmem:[#allocation2 + $0x68] sm:$0xff] %v1263_v15  }
 0x2d8   :  { %1286 = vst [vmem:[#allocation2 + $0x60] sm:$0xff] %v1258_v16  }
 0x2da   :  { %v1564_v17 = vpop.eup %1563 }
 0x2db   :  { %v1566_v18 = vpop.eup %1565 }
 0x2dc   :  { %v1568_v19 = vpop.eup %1567 }
 0x2dd   :  { %v1570_v20 = vpop.eup %1569  ;;  %v1273_v21 = vpack.c.bf16 %v1568_v19, %v1564_v17 }
 0x2de   :  { %v1268_v22 = vpack.c.bf16 %v1570_v20, %v1566_v18 }
 0x2df   :  { %1289 = vst [vmem:[#allocation2 + $0x78] sm:$0xff] %v1273_v21  }
 0x2e0   :  { %1288 = vst [vmem:[#allocation2 + $0x70] sm:$0xff] %v1268_v22  }
 0x2e1   :  { %1582 = shalt.err (!%p1579_p4)
}
 0x2e2   :  { %s1583_s10 = scalar_lea.hbm %s1913_s3, 2048 }
 0x2e3   :  { %p1584_p5 = scmp.ne.s32.totalorder %s1913_s3, %s1583_s10  ;;  %p1587_p6 = scmp.lt.u32.totalorder %s1583_s10, %s1913_s3 }
 0x2e5   :  { %p1589_p7 = pnand %p1587_p6, %p1584_p5 }
 0x2e7   :  { %1592 = shalt.err (!%p1589_p7)
}
 0x2e8   :  { %s1596_s14 = smov 64   ;;  %s1597_s15 = smov 4  }
 0x2e9   :  { %1056 = dma.vmem_to_hbm [thread:$0]  %s1051_s6, 2048, %s1913_s3, [#allocation3], %s1596_s14, %s1596_s14, %s1597_s15  }
 0x2ea   :  { %1593 = dma.done.wait [#allocation3], 2048  }
 0x2eb   :  { %1594 = vsyncadd [#allocation3], 4294965248 }
 0x2ec   :  { %1060 = vsyncpa [#allocation3], 1 }

</bundles_post_ra>
